<compile_context>
chip_gen: v5e
topology: v5e:2x2
jax: 0.10.0
libtpu: 0.0.40
codegen_flags: <defaults>
</compile_context>

<pallas_src>
import jax
import jax.numpy as jnp
from jax.experimental import pallas as pl
from jax.experimental.pallas import tpu as pltpu


def _value_embed_kernel(x_ref, w_ref, b_ref, o_ref):
    # x_ref: (BB, 1, TL)  -- BB batch rows, flattened spatial/temporal lanes
    # w_ref: (D, 1)       -- Linear(1, D) weight
    # b_ref: (D, 1)       -- Linear(1, D) bias
    # o_ref: (BB, D, TL)
    x = x_ref[...]                 # (BB, 1, TL)
    w = w_ref[...][None]           # (1, D, 1)
    b = b_ref[...][None]           # (1, D, 1)
    # Single broadcast FMA on the VPU; straight unmasked lane-dense store.
    o_ref[...] = (x * w + b).astype(o_ref.dtype)


def _largest_divisor_leq(n, cap):
    cap = max(1, min(n, cap))
    for d in range(cap, 0, -1):
        if n % d == 0:
            return d
    return 1


def st_data_embedding(inputs, inputs_mark, weight, bias,
                      *, block_budget_bytes=4 * 1024 * 1024):
    """inputs: (B, N, T); weight: (D, 1); bias: (D,). Returns (B, D, N, T)."""
    del inputs_mark  # unused in the reference forward
    B, N, T = inputs.shape
    D = weight.shape[0]
    NT = N * T
    itemsize = jnp.dtype(inputs.dtype).itemsize

    # Lane-dense layout: flatten (N, T) onto lanes, pad to a multiple of 128.
    NT_pad = ((NT + 127) // 128) * 128
    x = inputs.reshape(B, 1, NT)
    if NT_pad != NT:
        x = jnp.pad(x, ((0, 0), (0, 0), (0, NT_pad - NT)))
    w2 = weight.reshape(D, 1)
    b2 = bias.reshape(D, 1)

    # Size blocks against the output (write-bound). Keep one output block
    # <= block_budget_bytes so 2x double-buffering + the tiny input block stays
    # comfortably under the scoped-VMEM limit on every chip generation.
    out_bytes_per_lane = max(1, D * itemsize)
    tl_cap = max(128, (block_budget_bytes // out_bytes_per_lane) // 128 * 128)
    TL = 128 * _largest_divisor_leq(NT_pad // 128, tl_cap // 128)
    BB = _largest_divisor_leq(B, max(1, block_budget_bytes // (D * TL * itemsize)))
    grid = (B // BB, NT_pad // TL)   # (1, 1) at the small test shape

    cost = pl.CostEstimate(
        flops=2 * B * D * NT_pad,
        transcendentals=0,
        bytes_accessed=(B * NT_pad + B * D * NT_pad + 2 * D) * itemsize,
    )

    out_flat = pl.pallas_call(
        _value_embed_kernel,
        out_shape=jax.ShapeDtypeStruct((B, D, NT_pad), inputs.dtype),
        grid=grid,
        in_specs=[
            pl.BlockSpec((BB, 1, TL), lambda i, j: (i, 0, j)),
            pl.BlockSpec((D, 1), lambda i, j: (0, 0)),
            pl.BlockSpec((D, 1), lambda i, j: (0, 0)),
        ],
        out_specs=pl.BlockSpec((BB, D, TL), lambda i, j: (i, 0, j)),
        compiler_params=pltpu.CompilerParams(
            dimension_semantics=("parallel", "parallel"),
            vmem_limit_bytes=32 * 1024 * 1024,
        ),
        cost_estimate=cost,
    )(x, w2, b2)

    if NT_pad != NT:
        out_flat = out_flat[:, :, :NT]
    return out_flat.reshape(B, D, N, T)


if __name__ == "__main__":
    # configs['d_model'] = 32; inputs shaped (batch, nodes, time) = (2, 16, 16)
    B, N, T, D = 2, 16, 16, 32

    key = jax.random.PRNGKey(0)
    k_x, k_mark, k_w, k_b = jax.random.split(key, 4)

    inputs = jax.random.normal(k_x, (B, N, T), dtype=jnp.float32)
    inputs_mark = jax.random.normal(k_mark, (B, N, T), dtype=jnp.float32)

    # Deterministic synthetic parameters for nn.Linear(1, d_model)
    weight = jax.random.normal(k_w, (D, 1), dtype=jnp.float32)  # (out, in)
    bias = jax.random.normal(k_b, (D,), dtype=jnp.float32)

    out = st_data_embedding(inputs, inputs_mark, weight, bias)
    out = jax.block_until_ready(out)

    # Pure-JAX reference of the PyTorch forward
    ref = (inputs[..., None] * weight[:, 0] + bias)   # (B, N, T, D)
    ref = jnp.transpose(ref, (0, 3, 1, 2))            # (B, D, N, T)

    assert out.shape == (B, D, N, T), out.shape
    assert jnp.allclose(out, ref, atol=1e-5, rtol=1e-5)

    print("KERNEL_OK")
</pallas_src>

<mosaic_0001>
module attributes {stable_mosaic.version = 11 : i64} {
  func.func @_value_embed_kernel(%arg0: i32, %arg1: i32, %arg2: memref<2x1x256xf32, #tpu.memory_space<vmem>>, %arg3: memref<32x1xf32, #tpu.memory_space<vmem>>, %arg4: memref<32x1xf32, #tpu.memory_space<vmem>>, %arg5: memref<2x32x256xf32, #tpu.memory_space<vmem>>) attributes {dimension_semantics = [#tpu.dimension_semantics<parallel>, #tpu.dimension_semantics<parallel>], iteration_bounds = array<i64: 1, 1>, scalar_prefetch = 0 : i64, scratch_operands = 0 : i64, tpu.core_type = #tpu.core_type<tc>, window_params = [{transform_indices = @transform_0, window_bounds = array<i64: 2, 1, 256>}, {pipeline_mode = #tpu.pipeline_mode<synchronous>, transform_indices = @transform_1, window_bounds = array<i64: 32, 1>}, {pipeline_mode = #tpu.pipeline_mode<synchronous>, transform_indices = @transform_2, window_bounds = array<i64: 32, 1>}, {transform_indices = @transform_3, window_bounds = array<i64: 2, 32, 256>}]} {
    %c0 = arith.constant 0 : index
    %c0_0 = arith.constant 0 : index
    %c0_1 = arith.constant 0 : index
    %0 = vector.load %arg2[%c0, %c0_0, %c0_1] : memref<2x1x256xf32, #tpu.memory_space<vmem>>, vector<2x1x256xf32>
    %c0_2 = arith.constant 0 : index
    %c0_3 = arith.constant 0 : index
    %1 = vector.load %arg3[%c0_2, %c0_3] : memref<32x1xf32, #tpu.memory_space<vmem>>, vector<32x1xf32>
    %2 = vector.shape_cast %1 : vector<32x1xf32> to vector<1x32x1xf32>
    %c0_4 = arith.constant 0 : index
    %c0_5 = arith.constant 0 : index
    %3 = vector.load %arg4[%c0_4, %c0_5] : memref<32x1xf32, #tpu.memory_space<vmem>>, vector<32x1xf32>
    %4 = vector.shape_cast %3 : vector<32x1xf32> to vector<1x32x1xf32>
    %5 = vector.broadcast %0 : vector<2x1x256xf32> to vector<2x32x256xf32>
    %6 = vector.broadcast %2 : vector<1x32x1xf32> to vector<2x32x256xf32>
    %7 = arith.mulf %5, %6 : vector<2x32x256xf32>
    %8 = vector.broadcast %4 : vector<1x32x1xf32> to vector<2x32x256xf32>
    %9 = arith.addf %7, %8 : vector<2x32x256xf32>
    %c0_6 = arith.constant 0 : index
    %c0_7 = arith.constant 0 : index
    %c0_8 = arith.constant 0 : index
    %10 = vector.load %arg5[%c0_6, %c0_7, %c0_8] : memref<2x32x256xf32, #tpu.memory_space<vmem>>, vector<2x32x256xf32>
    tpu.vector_store %arg5[%c0_6, %c0_7, %c0_8], %9 {strides = array<i32>} : memref<2x32x256xf32, #tpu.memory_space<vmem>>, vector<2x32x256xf32>,
    return
  }
  func.func @transform_0(%arg0: i32, %arg1: i32) -> (i32, i32, i32) {
    %c0_i32 = arith.constant 0 : i32
    %c0_i32_0 = arith.constant 0 : i32
    return %arg0, %c0_i32, %arg1 : i32, i32, i32
  }
  func.func @transform_1(%arg0: i32, %arg1: i32) -> (i32, i32) {
    %c0_i32 = arith.constant 0 : i32
    %c0_i32_0 = arith.constant 0 : i32
    %c0_i32_1 = arith.constant 0 : i32
    return %c0_i32, %c0_i32_0 : i32, i32
  }
  func.func @transform_2(%arg0: i32, %arg1: i32) -> (i32, i32) {
    %c0_i32 = arith.constant 0 : i32
    %c0_i32_0 = arith.constant 0 : i32
    %c0_i32_1 = arith.constant 0 : i32
    return %c0_i32, %c0_i32_0 : i32, i32
  }
  func.func @transform_3(%arg0: i32, %arg1: i32) -> (i32, i32, i32) {
    %c0_i32 = arith.constant 0 : i32
    %c0_i32_0 = arith.constant 0 : i32
    return %arg0, %c0_i32, %arg1 : i32, i32, i32
  }
}

</mosaic_0001>

<bundles_post_ra>
// kernel: tpu_custom_call.1
= control target key start
LH: loop header
LB: loop body
LE: loop exit
PB: predicated region body
PF: predicated region fallthrough
CT: control target
= control target key end

     0   :  { %v174_v2 = vmov 0   ;;  %s231_s0 = inlined_call_operand.vmem [shape: f32[2,1,256], index: 0, kind: input, shape index: {}]   ;;  %s232_s1 = inlined_call_operand.vmem [shape: f32[32,1], index: 1, kind: input, shape index: {}]   ;;  %s233_s2 = inlined_call_operand.vmem [shape: f32[32,1], index: 2, kind: input, shape index: {}]   ;;  %s234_s3 = inlined_call_operand.hbm [shape: f32[2,32,256], index: 3, kind: output, shape index: {}]  }
   0x1   :  { %v19_v0 = vld [vmem:[%s232_s1 + $0x10] sm:$0xff]  ;;  %v17_v1 = vld [vmem:[%s232_s1] sm:$0xff]  ;;  %146 = vset.pattern.permute.xlu1 %v174_v2  ;;  %145 = vset.pattern.permute.xlu0 %v174_v2 }
   0x2   :  { %47 = vperm.xlu1 %146, %v19_v0   ;;  %37 = vperm.xlu0 %145, %v17_v1   ;;  %v21_v3 = vld [vmem:[%s233_s2] sm:$0xff] }
   0x3   :  { %8 = vsyncpa [#allocation3], 0  ;;  %147 = vset.pattern.permute.xlu2 %v174_v2  ;;  %v20_v4 = vld [vmem:[%s232_s1 + $0x18] sm:$0xff]  ;;  %v18_v5 = vld [vmem:[%s232_s1 + $0x8] sm:$0xff]  ;;  %s129_s6 = sshll.u32 %s234_s3, 4  ;;  %s176_s7 = smov 256   ;;  %s130_s6 = int_to_ptr.hbm [resolvable:$true] %s129_s6 }
   0x4   :  { %73 = vperm.xlu2 %147, %v21_v3   ;;  %v22_v6 = vld [vmem:[%s233_s2 + $0x8] sm:$0xff]  ;;  %v24_v7 = vld [vmem:[%s233_s2 + $0x18] sm:$0xff]  ;;  %v23_v8 = vld [vmem:[%s233_s2 + $0x10] sm:$0xff]  ;;  %s177_s8 = smov 16  }
   0x5   :  { %v15_v9 = vld [vmem:[%s231_s0] sm:$0x3]  ;;  %v16_v10 = vld [vmem:[%s231_s0 + $0x2] sm:$0x3]  ;;  %s175_s0 = smov [#allocation2]  }
   0x6   :  { %v27_v11 = vperm.slane %v15_v9, 0  ;;  %v28_v12 = vperm.slane %v15_v9, 1  ;;  %v29_v13 = vperm.slane %v16_v10, 0  ;;  %v30_v14 = vperm.slane %v16_v10, 1  ;;  %s127_s2 = sshll.u32 %s175_s0, 4  ;;  %s128_s2 = int_to_ptr.vmem [resolvable:$true] %s127_s2 }
   0xa   :  { %52 = vperm.xlu1 %146, %v20_v4   ;;  %42 = vperm.xlu0 %145, %v18_v5  }
   0xc   :  { %78 = vperm.xlu2 %147, %v22_v6  }
  0x12   :  { %88 = vperm.xlu1 %146, %v24_v7   ;;  %83 = vperm.xlu0 %145, %v23_v8  }
  0x5e   :  { %v74_v15 = vpop.permute.xlu2 %73 }
  0x66   :  { %v79_v32 = vpop.permute.xlu2 %78 }
  0x74   :  { %v48_v16 = vpop.permute.xlu1 %47  ;;  %v38_v17 = vpop.permute.xlu0 %37 }
  0x75   :  { %v55_v18 = vmul.f32 %v38_v17, %v27_v11  ;;  %v56_v19 = vmul.f32 %v38_v17, %v28_v12  ;;  %v63_v20 = vmul.f32 %v38_v17, %v29_v13  ;;  %v64_v21 = vmul.f32 %v38_v17, %v30_v14 }
  0x76   :  { %v59_v46 = vmul.f32 %v48_v16, %v27_v11  ;;  %v60_v48 = vmul.f32 %v48_v16, %v28_v12  ;;  %v67_v49 = vmul.f32 %v48_v16, %v29_v13  ;;  %v68_v51 = vmul.f32 %v48_v16, %v30_v14 }
  0x77   :  { %v91_v22 = vadd.f32 %v74_v15, %v55_v18  ;;  %v92_v23 = vadd.f32 %v74_v15, %v56_v19  ;;  %v99_v24 = vadd.f32 %v74_v15, %v63_v20  ;;  %v100_v25 = vadd.f32 %v74_v15, %v64_v21 }
  0x79   :  { %107 = vst [vmem:[#allocation2] sm:$0xff] %v91_v22 }
  0x7a   :  { %108 = vst [vmem:[#allocation2 + $0x8] sm:$0xff] %v92_v23 }
  0x7b   :  { %115 = vst [vmem:[#allocation2 + $0x40] sm:$0xff] %v99_v24 }
  0x7c   :  { %116 = vst [vmem:[#allocation2 + $0x48] sm:$0xff] %v100_v25  ;;  %v53_v26 = vpop.permute.xlu1 %52  ;;  %v43_v27 = vpop.permute.xlu0 %42 }
  0x7d   :  { %v57_v28 = vmul.f32 %v43_v27, %v27_v11  ;;  %v58_v29 = vmul.f32 %v43_v27, %v28_v12  ;;  %v65_v30 = vmul.f32 %v43_v27, %v29_v13  ;;  %v66_v31 = vmul.f32 %v43_v27, %v30_v14 }
  0x7e   :  { %v61_v37 = vmul.f32 %v53_v26, %v27_v11  ;;  %v62_v38 = vmul.f32 %v53_v26, %v28_v12  ;;  %v69_v39 = vmul.f32 %v53_v26, %v29_v13  ;;  %v70_v41 = vmul.f32 %v53_v26, %v30_v14 }
  0x7f   :  { %v93_v33 = vadd.f32 %v79_v32, %v57_v28  ;;  %v94_v34 = vadd.f32 %v79_v32, %v58_v29  ;;  %v101_v35 = vadd.f32 %v79_v32, %v65_v30  ;;  %v102_v36 = vadd.f32 %v79_v32, %v66_v31 }
  0x81   :  { %109 = vst [vmem:[#allocation2 + $0x10] sm:$0xff] %v93_v33 }
  0x82   :  { %110 = vst [vmem:[#allocation2 + $0x18] sm:$0xff] %v94_v34 }
  0x83   :  { %117 = vst [vmem:[#allocation2 + $0x50] sm:$0xff] %v101_v35 }
  0x84   :  { %118 = vst [vmem:[#allocation2 + $0x58] sm:$0xff] %v102_v36  ;;  %v89_v40 = vpop.permute.xlu1 %88  ;;  %v84_v42 = vpop.permute.xlu0 %83 }
  0x85   :  { %v97_v43 = vadd.f32 %v89_v40, %v61_v37  ;;  %v98_v44 = vadd.f32 %v89_v40, %v62_v38  ;;  %v105_v45 = vadd.f32 %v89_v40, %v69_v39  ;;  %v106_v47 = vadd.f32 %v89_v40, %v70_v41 }
  0x86   :  { %v95_v50 = vadd.f32 %v84_v42, %v59_v46  ;;  %v96_v52 = vadd.f32 %v84_v42, %v60_v48  ;;  %v103_v53 = vadd.f32 %v84_v42, %v67_v49  ;;  %v104_v54 = vadd.f32 %v84_v42, %v68_v51 }
  0x87   :  { %113 = vst [vmem:[#allocation2 + $0x30] sm:$0xff] %v97_v43 }
  0x88   :  { %114 = vst [vmem:[#allocation2 + $0x38] sm:$0xff] %v98_v44 }
  0x89   :  { %121 = vst [vmem:[#allocation2 + $0x70] sm:$0xff] %v105_v45 }
  0x8a   :  { %122 = vst [vmem:[#allocation2 + $0x78] sm:$0xff] %v106_v47 }
  0x8b   :  { %111 = vst [vmem:[#allocation2 + $0x20] sm:$0xff] %v95_v50 }
  0x8c   :  { %112 = vst [vmem:[#allocation2 + $0x28] sm:$0xff] %v96_v52 }
  0x8d   :  { %119 = vst [vmem:[#allocation2 + $0x60] sm:$0xff] %v103_v53 }
  0x8e   :  { %120 = vst [vmem:[#allocation2 + $0x68] sm:$0xff] %v104_v54 }
  0x8f   :  { %135 = dma.vmem_to_hbm [thread:$0]  %s128_s2, 2048, %s130_s6, [#allocation3], %s176_s7, %s176_s7, %s177_s8  }
  0x90   :  { %172 = dma.done.wait [#allocation3], 2048  }
  0x91   :  { %173 = vsyncadd [#allocation3], 4294965248 }
  0x92   :  { %140 = vsyncpa [#allocation3], 1 }

</bundles_post_ra>
